<compile_context>
chip_gen: v6e
topology: v6e:2x2x1
jax: 0.10.0
libtpu: 0.0.40
codegen_flags: <defaults>
</compile_context>

<pallas_src>
import jax
import jax.numpy as jnp
from jax.experimental import pallas as pl
from jax.experimental.pallas import tpu as pltpu

BN_EPS = 1e-5
LANE = 128
_VMEM_LIMIT = 32 * 1024 * 1024   # safe on all generations; tiles sized well below it


def _round_up(x, m):
    return ((x + m - 1) // m) * m


# ------------------------------ Pallas kernels ------------------------------ #

def _conv_glu_kernel(p_ref, w_ref, b_ref, o_ref):
    """out = glu(P @ W + b) for one (TM, K) patch tile (no BatchNorm)."""
    y = jnp.dot(p_ref[...], w_ref[...], preferred_element_type=jnp.float32)
    y = y + b_ref[...]
    half = o_ref.shape[-1]
    o_ref[...] = (y[:, :half] * jax.nn.sigmoid(y[:, half:])).astype(o_ref.dtype)


def _conv_stats_kernel(p_ref, w_ref, b_ref, y_ref, s1_ref, s2_ref):
    """Conv+BN pass 1: tiled matmul + bias, accumulate channel sum / sum-of-squares.

    Statistics are accumulated on the bias-free matmul result z, so zero-padded
    rows contribute nothing; the bias shift is folded into the mean afterwards.
    The column sums run on the MXU (ones-row matmul) to keep the XLU slot free.
    """
    @pl.when(pl.program_id(0) == 0)
    def _init():
        s1_ref[...] = jnp.zeros_like(s1_ref)
        s2_ref[...] = jnp.zeros_like(s2_ref)

    z = jnp.dot(p_ref[...], w_ref[...], preferred_element_type=jnp.float32)
    ones = jnp.ones((1, z.shape[0]), jnp.float32)
    s1_ref[...] += jnp.dot(ones, z, preferred_element_type=jnp.float32)
    s2_ref[...] += jnp.dot(ones, z * z, preferred_element_type=jnp.float32)
    y_ref[...] = z + b_ref[...]


def _bn_glu_kernel(y_ref, scale_ref, shift_ref, o_ref):
    """Conv+BN pass 2: y*scale + shift, then GLU; tiled over rows."""
    yn = y_ref[...] * scale_ref[...] + shift_ref[...]
    half = o_ref.shape[-1]
    o_ref[...] = (yn[:, :half] * jax.nn.sigmoid(yn[:, half:])).astype(o_ref.dtype)


def _head_kernel(h_ref, c_ref, fw_ref, fb_ref, ew_ref, eb_ref, o_ref):
    """Spatial sum + fout linear + embed projection term (single tiny block)."""
    hs = jnp.sum(h_ref[...].astype(jnp.float32), axis=1)                       # (N, C)
    out = jnp.dot(hs, fw_ref[...], preferred_element_type=jnp.float32) + fb_ref[...]
    e = jnp.dot(c_ref[...], ew_ref[...], preferred_element_type=jnp.float32) + eb_ref[...]
    o_ref[...] = out + jnp.sum(e * hs, axis=1, keepdims=True)


# ------------------------------- JAX-side glue ------------------------------ #

def _pick_tm(m, target=256):
    return target if m >= target else _round_up(m, 8)


def _im2col(x, kh, kw, sh, sw, ph, pw):
    """x: (N, H, W, C) -> patches (N*Ho*Wo, kh*kw*C), Ho, Wo  (tap-major columns)."""
    N, H, W, C = x.shape
    xp = jnp.pad(x, ((0, 0), (ph, ph), (pw, pw), (0, 0)))
    Ho = (H + 2 * ph - kh) // sh + 1
    Wo = (W + 2 * pw - kw) // sw + 1
    cols = []
    for i in range(kh):
        for j in range(kw):
            cols.append(xp[:, i:i + sh * Ho:sh, j:j + sw * Wo:sw, :])
    p = jnp.stack(cols, axis=3)                          # (N, Ho, Wo, kh*kw, C)
    return p.reshape(N * Ho * Wo, kh * kw * C), Ho, Wo


def conv_glu(x, layer):
    """x: (N,H,W,Cin) bf16 NHWC. Conv2d (+BatchNorm train) + GLU; returns bf16 NHWC."""
    N = x.shape[0]
    kh, kw = layer["kh"], layer["kw"]
    sh, sw = layer["stride"]
    ph, pw = layer["pad"]
    wmat, bias = layer["wmat"], layer["bias"]            # (K, Cout) bf16, (1, Cout) f32
    K, Cout = wmat.shape
    half = Cout // 2

    patches, Ho, Wo = _im2col(x, kh, kw, sh, sw, ph, pw)
    M = patches.shape[0]
    tm = _pick_tm(M)
    m_pad = _round_up(M, tm)
    if m_pad > M:
        patches = jnp.pad(patches, ((0, m_pad - M), (0, 0)))   # zero rows: stats-safe
    grid = (m_pad // tm,)

    p_spec = pl.BlockSpec((tm, K), lambda i: (i, 0))
    w_spec = pl.BlockSpec((K, Cout), lambda i: (0, 0))
    b_spec = pl.BlockSpec((1, Cout), lambda i: (0, 0))
    row_map = lambda i: (i, 0)
    matmul_flops = 2 * m_pad * K * Cout

    if not layer["bn"]:
        out = pl.pallas_call(
            _conv_glu_kernel,
            out_shape=jax.ShapeDtypeStruct((m_pad, half), jnp.bfloat16),
            grid=grid,
            in_specs=[p_spec, w_spec, b_spec],
            out_specs=pl.BlockSpec((tm, half), row_map),
            compiler_params=pltpu.CompilerParams(
                dimension_semantics=("parallel",),
                vmem_limit_bytes=_VMEM_LIMIT),
            cost_estimate=pl.CostEstimate(
                flops=matmul_flops,
                transcendentals=m_pad * half,
                bytes_accessed=patches.size * 2 + wmat.size * 2 + m_pad * half * 2),
        )(patches, wmat, bias)
        return out[:M].reshape(N, Ho, Wo, half)

    # ---------------- Conv + BatchNorm(train) + GLU : two tiled passes -------- #
    y, s1, s2 = pl.pallas_call(
        _conv_stats_kernel,
        out_shape=(jax.ShapeDtypeStruct((m_pad, Cout), jnp.float32),
                   jax.ShapeDtypeStruct((1, Cout), jnp.float32),
                   jax.ShapeDtypeStruct((1, Cout), jnp.float32)),
        grid=grid,
        in_specs=[p_spec, w_spec, b_spec],
        out_specs=(pl.BlockSpec((tm, Cout), row_map),
                   pl.BlockSpec((1, Cout), lambda i: (0, 0)),
                   pl.BlockSpec((1, Cout), lambda i: (0, 0))),
        compiler_params=pltpu.CompilerParams(
            dimension_semantics=("arbitrary",),   # stats accumulate across M blocks
            vmem_limit_bytes=_VMEM_LIMIT),
        cost_estimate=pl.CostEstimate(
            flops=matmul_flops + 4 * m_pad * Cout,
            transcendentals=0,
            bytes_accessed=patches.size * 2 + wmat.size * 2 + m_pad * Cout * 4),
    )(patches, wmat, bias)

    # Tiny per-channel math (Cout elements) in f32 between the two passes.
    mean_z = s1 / M
    var = jnp.maximum(s2 / M - mean_z * mean_z, 0.0)     # biased var, like PyTorch
    mean = mean_z + bias                                  # bias shifts mean only
    scale = layer["gamma"] * jax.lax.rsqrt(var + BN_EPS)
    shift = layer["beta"] - mean * scale

    out = pl.pallas_call(
        _bn_glu_kernel,
        out_shape=jax.ShapeDtypeStruct((m_pad, half), jnp.bfloat16),
        grid=grid,
        in_specs=[pl.BlockSpec((tm, Cout), row_map),
                  pl.BlockSpec((1, Cout), lambda i: (0, 0)),
                  pl.BlockSpec((1, Cout), lambda i: (0, 0))],
        out_specs=pl.BlockSpec((tm, half), row_map),
        compiler_params=pltpu.CompilerParams(
            dimension_semantics=("parallel",),
            vmem_limit_bytes=_VMEM_LIMIT),
        cost_estimate=pl.CostEstimate(
            flops=3 * m_pad * Cout,
            transcendentals=m_pad * half,
            bytes_accessed=m_pad * Cout * 4 + m_pad * half * 2),
    )(y, scale, shift)
    return out[:M].reshape(N, Ho, Wo, half)


# --------------------------- parameter preparation -------------------------- #

def _prep_conv(w, b, gamma, beta, cin_act, stride, pad, lane=LANE):
    """Pad each GLU half to a multiple of `lane` channels (lane-dense stores,
    128-aligned split), pad Cin to the actual activation channel count, and
    reshape to an im2col (K, Cout) bf16 matrix.  Padding is exact (zeros)."""
    cout, cin, kh, kw = w.shape
    half = cout // 2
    half_p = _round_up(half, lane)

    def pad_halves(a, axis, fill=0.0):
        ah, ag = jnp.split(a, 2, axis=axis)
        widths = [(0, 0)] * a.ndim
        widths[axis] = (0, half_p - half)
        ah = jnp.pad(ah, widths, constant_values=fill)
        ag = jnp.pad(ag, widths, constant_values=fill)
        return jnp.concatenate([ah, ag], axis=axis)

    wp = pad_halves(w.astype(jnp.float32), axis=0)                       # (2*half_p, cin, kh, kw)
    wp = jnp.pad(wp, ((0, 0), (0, cin_act - cin), (0, 0), (0, 0)))       # padded input channels
    wmat = jnp.transpose(wp, (2, 3, 1, 0)).reshape(kh * kw * cin_act, 2 * half_p)

    layer = dict(
        wmat=wmat.astype(jnp.bfloat16),
        bias=pad_halves(b.astype(jnp.float32), axis=0).reshape(1, -1),
        kh=kh, kw=kw, stride=stride, pad=pad, bn=gamma is not None,
    )
    if gamma is not None:
        layer["gamma"] = pad_halves(gamma.astype(jnp.float32), axis=0, fill=1.0).reshape(1, -1)
        layer["beta"] = pad_halves(beta.astype(jnp.float32), axis=0, fill=0.0).reshape(1, -1)
    return layer, half_p


def prepare_params(params):
    """One-time relayout: im2col weight matrices (bf16), lane-dense channel
    padding, transposed head weights.  Hoisted out of the per-call forward."""
    layers = []
    layer, ch = _prep_conv(params["cin_w"], params["cin_b"], None, None,
                           cin_act=params["cin_w"].shape[1],
                           stride=(1, 1), pad=(1, 1))
    layers.append(layer)
    for d in params["down"]:
        layer, ch = _prep_conv(d["w"], d["b"], d["gamma"], d["beta"],
                               cin_act=ch, stride=d["stride"], pad=d["pad"])
        layers.append(layer)

    feat = ch                                     # padded channel count of the final map
    c_feat = params["fout_w"].shape[1]            # unpadded base*8
    head = dict(
        fout_w=jnp.pad(jnp.transpose(params["fout_w"]).astype(jnp.float32),
                       ((0, feat - c_feat), (0, 0))),                     # (feat, 1)
        fout_b=params["fout_b"].reshape(1, 1).astype(jnp.float32),
        embed_w=jnp.pad(jnp.transpose(params["embed_w"]).astype(jnp.float32),
                        ((0, 0), (0, feat - c_feat))),                    # (2*cls, feat)
        embed_b=jnp.pad(params["embed_b"].astype(jnp.float32),
                        (0, feat - c_feat)).reshape(1, -1),
    )
    return dict(layers=layers, head=head)


def init_params(key, cls_num, base):
    ks = jax.random.split(key, 16)

    def normal(k, shape, std=0.02, mean=0.0):
        return mean + std * jax.random.normal(k, shape, jnp.float32)

    params = {}
    params["cin_w"] = normal(ks[0], (base * 2, 1, 3, 3))          # N(0, 0.02)
    params["cin_b"] = normal(ks[1], (base * 2,), std=0.01)

    down_cfg = [
        (base,     base * 4,  (3, 3), (2, 2), (1, 1)),
        (base * 2, base * 8,  (3, 3), (2, 2), (1, 1)),
        (base * 4, base * 16, (3, 3), (2, 2), (1, 1)),
        (base * 8, base * 16, (5, 1), (1, 1), (2, 0)),
    ]
    params["down"] = []
    kidx = 2
    for (cin, cout, k, s, p) in down_cfg:
        w = normal(ks[kidx], (cout, cin, k[0], k[1])); kidx += 1   # N(0, 0.02)
        bb = normal(ks[kidx], (cout,), std=0.01); kidx += 1
        gamma = normal(ks[kidx], (cout,), std=0.02, mean=1.0); kidx += 1   # N(1, 0.02)
        beta = jnp.zeros((cout,), jnp.float32)
        params["down"].append(dict(w=w, b=bb, gamma=gamma, beta=beta, stride=s, pad=p))

    params["embed_w"] = 0.1 * jax.random.normal(ks[kidx], (base * 8, cls_num * 2), jnp.float32); kidx += 1
    params["embed_b"] = jnp.zeros((base * 8,), jnp.float32)
    params["fout_w"] = 0.1 * jax.random.normal(ks[kidx], (1, base * 8), jnp.float32); kidx += 1
    params["fout_b"] = jnp.zeros((1,), jnp.float32)
    return params


# --------------------------------- forward ---------------------------------- #

def discriminator_forward(prepared, x_nchw, c):
    # PyTorch NCHW (N,1,H,W) -> NHWC; bf16 activations feed the MXU.
    h = jnp.transpose(x_nchw, (0, 2, 3, 1)).astype(jnp.bfloat16)
    for layer in prepared["layers"]:
        h = conv_glu(h, layer)

    N, Ho, Wo, C = h.shape
    head = prepared["head"]
    out = pl.pallas_call(
        _head_kernel,
        out_shape=jax.ShapeDtypeStruct((N, 1), jnp.float32),
        in_specs=[pl.BlockSpec(memory_space=pltpu.MemorySpace.VMEM)] * 6,
        out_specs=pl.BlockSpec(memory_space=pltpu.MemorySpace.VMEM),
        compiler_params=pltpu.CompilerParams(vmem_limit_bytes=_VMEM_LIMIT),
    )(h.reshape(N, Ho * Wo, C), c.astype(jnp.float32),
      head["fout_w"], head["fout_b"], head["embed_w"], head["embed_b"])
    return out


if __name__ == "__main__":
    key = jax.random.PRNGKey(0)
    base = 8            # small stand-in for the default base=128
    cls_num = 4
    N, H, W = 2, 16, 16

    kp, kx, kc = jax.random.split(key, 3)
    params = init_params(kp, cls_num, base)
    prepared = prepare_params(params)                       # one-time weight relayout
    x = jax.random.normal(kx, (N, 1, H, W), jnp.float32)    # NCHW like PyTorch
    c = jax.random.normal(kc, (N, cls_num * 2), jnp.float32)

    out = discriminator_forward(prepared, x, c)
    out = jax.block_until_ready(out)
    assert out.shape == (N, 1) and out.dtype == jnp.float32
    print("KERNEL_OK")
</pallas_src>

<mosaic_0001>
module attributes {stable_mosaic.version = 11 : i64} {
  func.func @_conv_glu_kernel(%arg0: i32, %arg1: memref<256x9xbf16, #tpu.memory_space<vmem>>, %arg2: memref<9x256xbf16, #tpu.memory_space<vmem>>, %arg3: memref<1x256xf32, #tpu.memory_space<vmem>>, %arg4: memref<256x128xbf16, #tpu.memory_space<vmem>>) attributes {dimension_semantics = [#tpu.dimension_semantics<parallel>], iteration_bounds = array<i64: 2>, scalar_prefetch = 0 : i64, scratch_operands = 0 : i64, tpu.core_type = #tpu.core_type<tc>, window_params = [{transform_indices = @transform_0, window_bounds = array<i64: 256, 9>}, {pipeline_mode = #tpu.pipeline_mode<synchronous>, transform_indices = @transform_1, window_bounds = array<i64: 9, 256>}, {pipeline_mode = #tpu.pipeline_mode<synchronous>, transform_indices = @transform_2, window_bounds = array<i64: 1, 256>}, {transform_indices = @transform_3, window_bounds = array<i64: 256, 128>}]} {
    %c0 = arith.constant 0 : index
    %c0_0 = arith.constant 0 : index
    %0 = vector.load %arg1[%c0, %c0_0] : memref<256x9xbf16, #tpu.memory_space<vmem>>, vector<256x9xbf16>
    %c0_1 = arith.constant 0 : index
    %c0_2 = arith.constant 0 : index
    %1 = vector.load %arg2[%c0_1, %c0_2] : memref<9x256xbf16, #tpu.memory_space<vmem>>, vector<9x256xbf16>
    %cst = arith.constant dense<0.000000e+00> : vector<256x256xf32>
    %2 = tpu.matmul %0, %1, %cst {dimension_numbers = #tpu.dot_dimension_numbers<[1], [0], [0], [1], [0, 0, 1, 1], [], []>} : vector<256x9xbf16>, vector<9x256xbf16>, vector<256x256xf32> -> vector<256x256xf32>
    %c0_3 = arith.constant 0 : index
    %c0_4 = arith.constant 0 : index
    %3 = vector.load %arg3[%c0_3, %c0_4] : memref<1x256xf32, #tpu.memory_space<vmem>>, vector<1x256xf32>
    %4 = vector.broadcast %3 : vector<1x256xf32> to vector<256x256xf32>
    %5 = arith.addf %2, %4 : vector<256x256xf32>
    %6 = vector.extract_strided_slice %5 {offsets = [0, 0], sizes = [256, 128], strides = [1, 1]} : vector<256x256xf32> to vector<256x128xf32>
    %7 = vector.extract_strided_slice %5 {offsets = [0, 128], sizes = [256, 128], strides = [1, 1]} : vector<256x256xf32> to vector<256x128xf32>
    %8 = arith.negf %7 : vector<256x128xf32>
    %9 = math.exp %8 : vector<256x128xf32>
    %cst_5 = arith.constant 1.000000e+00 : f32
    %10 = vector.broadcast %cst_5 : f32 to vector<256x128xf32>
    %11 = arith.addf %10, %9 : vector<256x128xf32>
    %12 = arith.divf %10, %11 : vector<256x128xf32>
    %13 = arith.mulf %6, %12 : vector<256x128xf32>
    %14 = arith.truncf %13 : vector<256x128xf32> to vector<256x128xbf16>
    %c0_6 = arith.constant 0 : index
    %c0_7 = arith.constant 0 : index
    %15 = vector.load %arg4[%c0_6, %c0_7] : memref<256x128xbf16, #tpu.memory_space<vmem>>, vector<256x128xbf16>
    tpu.vector_store %arg4[%c0_6, %c0_7], %14 {strides = array<i32>} : memref<256x128xbf16, #tpu.memory_space<vmem>>, vector<256x128xbf16>,
    return
  }
  func.func @transform_0(%arg0: i32) -> (i32, i32) {
    %c0_i32 = arith.constant 0 : i32
    %c0_i32_0 = arith.constant 0 : i32
    return %arg0, %c0_i32 : i32, i32
  }
  func.func @transform_1(%arg0: i32) -> (i32, i32) {
    %c0_i32 = arith.constant 0 : i32
    %c0_i32_0 = arith.constant 0 : i32
    %c0_i32_1 = arith.constant 0 : i32
    return %c0_i32, %c0_i32_0 : i32, i32
  }
  func.func @transform_2(%arg0: i32) -> (i32, i32) {
    %c0_i32 = arith.constant 0 : i32
    %c0_i32_0 = arith.constant 0 : i32
    %c0_i32_1 = arith.constant 0 : i32
    return %c0_i32, %c0_i32_0 : i32, i32
  }
  func.func @transform_3(%arg0: i32) -> (i32, i32) {
    %c0_i32 = arith.constant 0 : i32
    %c0_i32_0 = arith.constant 0 : i32
    return %arg0, %c0_i32 : i32, i32
  }
}

</mosaic_0001>

<bundles_post_ra>
// kernel: tpu_custom_call.1
= control target key start
LH: loop header
LB: loop body
LE: loop exit
PB: predicated region body
PF: predicated region fallthrough
CT: control target
= control target key end

     0   :  { %8 = vsyncpa [#allocation3], 0  ;;  %s1878_s0 = inlined_call_operand.vmem [shape: bf16[512,9], index: 0, kind: input, shape index: {}]   ;;  %s1879_s1 = inlined_call_operand.vmem [shape: bf16[9,256], index: 1, kind: input, shape index: {}]   ;;  %s1880_s2 = inlined_call_operand.vmem [shape: f32[1,256], index: 2, kind: input, shape index: {}]   ;;  %s1881_s3 = inlined_call_operand.hbm [shape: bf16[512,128], index: 3, kind: output, shape index: {}]  }
   0x1   :  { %10 = vsyncpa [#allocation3 + $0x1], 0  ;;  %s1536_s12 = smov 0   ;;  %s1538_s13 = smov 0  }
   0x2   :  { %s1540_s14 = smov 0   ;;  %s1542_s15 = smov 0  }
   0x3 LB: > { %s1557_s16 = sadd.s32 4294967295, %s1509_s15   ;;  %s1019_s17 = sadd.s32 4294967294, %s1509_s15   ;;  %s1509_s15 = sphi %s1542_s15, %s1887_s15   ;;  %s1505_s14 = sphi %s1540_s14, %s1886_s14   ;;  %s1501_s13 = sphi %s1538_s13, %s1885_s13   ;;  %s1497_s12 = sphi %s1536_s12, %s1884_s12  }
   0x4   : > { %s1561_s18 = sadd.s32 1, %s1509_s15   ;;  %s91_s19 = sadd.s32 1, %s1505_s14 }
   0x5   : > { %s88_s20 = ssub.s32 %s1509_s15, %s1561_s18  ;;  %p101_p0 = scmp.ne.s32.totalorder %s1505_s14, %s1501_s13 }
   0x6   : > { %p89_p1 = scmp.eq.s32.totalorder %s88_s20, 0  ;;  %p102_p2 = scmp.eq.s32.totalorder %s1557_s16, 1 }
   0x7   : > { %p107_p3 = scmp.ne.s32.totalorder %s1501_s13, %s1497_s12  ;;  %p108_p4 = scmp.eq.s32.totalorder %s1019_s17, 1 }
   0x8   : > { %s1572_s21 = scalar_select %p89_p1, %s1505_s14, %s91_s19  }
   0x9   : > { %p1574_p5 = por %p102_p2, %p101_p0  ;;  %p1578_p6 = por %p108_p4, %p107_p3 }
   0xa   : > { %p1022_p7 = scmp.ge.s32.totalorder %s1509_s15, 1  ;;  %p141_p8 = scmp.lt.s32.totalorder %s1509_s15, 3 }
   0xc   : > { %p142_p9 = pnand %p1022_p7, %p141_p8 }
   0xd   : > { %s1024_s28 = sshll.u32 (!%p142_p9), %s1557_s16, 5  ;;  %s162_s8 = sand.u32 (!%p142_p9), 1, %s1501_s13  }
   0xe   : > { %145 = sbr.rel (%p142_p9) target bundleno = 338 (0x152), region = 32  ;;  %p166_p10 = scmp.lt.s32.totalorder (!%p142_p9), %s1024_s28, 63 }
   0xf   : > { %s1710_s9 = sshll.u32 (!%p142_p9), %s162_s8, 7  ;;  %s1161_s11 = sshll.u32 (!%p142_p9), %s1557_s16, 11 }
  0x10   : > { %s1725_s10 = scalar_lea.vmem (!%p142_p9), [#allocation2], %s1710_s9  ;;  %s1830_s24 = scalar_lea.hbm (!%p142_p9), %s1881_s3, %s1161_s11 }
  0x11   : > { %s957_s17 = sshll.u32 (!%p142_p9), %s1725_s10, 4  ;;  %s1838_s16 = scalar_lea.sflag (!%p142_p9), [#allocation3], %s162_s8  ;;  %s1832_s17 = int_to_ptr.vmem [resolvable:$true] %s957_s17 }
  0x12   : > { %s1449_s25 = scalar_lea.vmem (!%p142_p9), %s1832_s17, 2048  ;;  %s1513_s26 = smov (!%p142_p9), [#allocation2]  }
  0x13   : > { %v1302_v0 = vld [vmem:[%s1879_s1 + $0x4] ss:$8 sps:$4 sm:$0x1f]   ;;  %vm356_vm0 = vcmask 1043456   ;;  %vm357_vm1 = vcmask 1044480   ;;  %v1511_v2 = vmov 65535   ;;  %v209_v24 = vlaneseq  ;;  %p1450_p11 = scmp.ne.s32.totalorder %s1832_s17, %s1449_s25 }
  0x14   : > { %v1304_v1 = vld [vmem:[%s1879_s1] ss:$8 sps:$4 sm:$0x1f]   ;;  %v358_v3 = vsel %vm356_vm0, 4294967295, %v1511_v2  ;;  %v1512_v5 = vmov 0   ;;  %s1889_s28 = smov (!%p166_p10, %s1024_s28), 63 }
  0x15   : > { %v359_v4 = vsel %vm357_vm1, %v358_v3, 0  ;;  %398 = vmatprep.mubr.bf16.mxu0 %v1512_v5  ;;  %478 = vmatprep.mubr.bf16.mxu1 %v1512_v5  ;;  %s1025_s29 = sshll.u32 %s1889_s28, 2  ;;  %vm307_vm2 = vcmask 72704   ;;  %v1628_v25 = vshrl.u32 %v209_v24, 7  ;;  %v1634_v27 = vld [vmem:[%s1880_s2] sm:$0x3]  ;;  %p1451_p12 = pnand %p1450_p11, %p1574_p5 }
  0x16   : > { %v364_v6 = vand.u32 %v1302_v0, %v359_v4  ;;  %v361_v7 = vand.u32 %v1304_v1, %v359_v4  ;;  %s1594_s5 = scalar_lea.vmem %s1878_s0, %s1025_s29  ;;  %s1453_s27 = sshll.u32 %s1513_s26, 4  ;;  %s1454_s27 = int_to_ptr.vmem [resolvable:$false] %s1453_s27 }
  0x17   : > { %v1305_v8 = vld [vmem:[%s1594_s5] sm:$0xff]   ;;  %v1307_v10 = vld [vmem:[%s1594_s5 + $0x8] sm:$0xff]   ;;  %v1309_v12 = vld [vmem:[%s1594_s5 + $0x10] sm:$0xff]   ;;  %v215_v26 = vsub.s32 1, %v1628_v25  ;;  %p1452_p13 = pneg %p1451_p12  ;;  %s1455_s28 = scalar_lea.vmem %s1454_s27, 4096 }
  0x18   : > { %380 = vmatprep.subr.bf16.mxu0 %v364_v6  ;;  %1257 = vmatprep.subr.bf16.mxu1 %v364_v6  ;;  %v1306_v9 = vld [vmem:[%s1594_s5 + $0x40] sm:$0xff]   ;;  %v1308_v11 = vld [vmem:[%s1594_s5 + $0x48] sm:$0xff]   ;;  %v1310_v13 = vld [vmem:[%s1594_s5 + $0x50] sm:$0xff]   ;;  %p1456_p0 = scmp.lt.s32.totalorder %s1832_s17, %s1454_s27  ;;  %p1457_p1 = scmp.lt.s32.totalorder %s1455_s28, %s1449_s25 }
  0x19   : > { %381 = vmatpush1.bf16.msra.mxu0 %v361_v7  ;;  %1258 = vmatpush1.bf16.msra.mxu1 %v361_v7  ;;  %v1311_v14 = vld [vmem:[%s1594_s5 + $0x18] sm:$0xff]   ;;  %v1313_v16 = vld [vmem:[%s1594_s5 + $0x20] sm:$0xff]   ;;  %v1315_v18 = vld [vmem:[%s1594_s5 + $0x28] sm:$0xff]   ;;  %v1637_v28 = vrot.slane %v1634_v27, %v215_v26 }
  0x1a   : > { %v1312_v15 = vld [vmem:[%s1594_s5 + $0x58] sm:$0xff]   ;;  %v1314_v17 = vld [vmem:[%s1594_s5 + $0x60] sm:$0xff]   ;;  %v1316_v19 = vld [vmem:[%s1594_s5 + $0x68] sm:$0xff]   ;;  %p1458_p2 = por %p1457_p1, %p1456_p0 }
  0x1b   : > { %v1317_v20 = vld [vmem:[%s1594_s5 + $0x30] sm:$0xff]   ;;  %v1319_v22 = vld [vmem:[%s1594_s5 + $0x38] sm:$0xff]  }
  0x1c   : > { %1044 = vmatmul.mubr.msk.bf16.vlgmr.msra.gmra.mxu0 %vm307_vm2, %v1305_v8  ;;  %1052 = vmatmul.mubr.msk.bf16.vlgmr.msra.gmra.mxu1 %vm307_vm2, %v1306_v9  ;;  %v1318_v21 = vld [vmem:[%s1594_s5 + $0x70] sm:$0xff]   ;;  %v1320_v23 = vld [vmem:[%s1594_s5 + $0x78] sm:$0xff]   ;;  %p1459_p3 = pnand %p1458_p2, %p1452_p13 }
  0x1d   : > { %408 = vmatprep.mubr.bf16.mxu0 %v1512_v5  ;;  %488 = vmatprep.mubr.bf16.mxu1 %v1512_v5 }
  0x24   : > { %1045 = vmatmul.mubr.msk.bf16.gmra.mxu0 %vm307_vm2, %v1307_v10  ;;  %1053 = vmatmul.mubr.msk.bf16.gmra.mxu1 %vm307_vm2, %v1308_v11 }
  0x25   : > { %418 = vmatprep.mubr.bf16.mxu0 %v1512_v5  ;;  %498 = vmatprep.mubr.bf16.mxu1 %v1512_v5 }
  0x2c   : > { %1046 = vmatmul.mubr.msk.bf16.gmra.mxu0 %vm307_vm2, %v1309_v12  ;;  %1054 = vmatmul.mubr.msk.bf16.gmra.mxu1 %vm307_vm2, %v1310_v13 }
  0x2d   : > { %428 = vmatprep.mubr.bf16.mxu0 %v1512_v5  ;;  %508 = vmatprep.mubr.bf16.mxu1 %v1512_v5 }
  0x34   : > { %1047 = vmatmul.mubr.msk.bf16.gmra.mxu0 %vm307_vm2, %v1311_v14  ;;  %1055 = vmatmul.mubr.msk.bf16.gmra.mxu1 %vm307_vm2, %v1312_v15 }
  0x35   : > { %438 = vmatprep.mubr.bf16.mxu0 %v1512_v5  ;;  %518 = vmatprep.mubr.bf16.mxu1 %v1512_v5 }
  0x3c   : > { %1048 = vmatmul.mubr.msk.bf16.gmra.mxu0 %vm307_vm2, %v1313_v16  ;;  %1056 = vmatmul.mubr.msk.bf16.gmra.mxu1 %vm307_vm2, %v1314_v17 }
  0x3d   : > { %448 = vmatprep.mubr.bf16.mxu0 %v1512_v5  ;;  %528 = vmatprep.mubr.bf16.mxu1 %v1512_v5 }
  0x44   : > { %1049 = vmatmul.mubr.msk.bf16.gmra.mxu0 %vm307_vm2, %v1315_v18  ;;  %1057 = vmatmul.mubr.msk.bf16.gmra.mxu1 %vm307_vm2, %v1316_v19 }
  0x45   : > { %458 = vmatprep.mubr.bf16.mxu0 %v1512_v5  ;;  %538 = vmatprep.mubr.bf16.mxu1 %v1512_v5 }
  0x4c   : > { %1050 = vmatmul.mubr.msk.bf16.gmra.mxu0 %vm307_vm2, %v1317_v20  ;;  %1058 = vmatmul.mubr.msk.bf16.gmra.mxu1 %vm307_vm2, %v1318_v21 }
  0x4d   : > { %468 = vmatprep.mubr.bf16.mxu0 %v1512_v5  ;;  %548 = vmatprep.mubr.bf16.mxu1 %v1512_v5 }
  0x54   : > { %1051 = vmatmul.mubr.msk.bf16.gmra.mxu0 %vm307_vm2, %v1319_v22  ;;  %1059 = vmatmul.mubr.msk.bf16.gmra.mxu1 %vm307_vm2, %v1320_v23 }
  0xdc   : > { %v1639_v29 = vpop.f32.mrf.mxu0  ;;  %v1641_v30 = vpop.f32.mrf.mxu1 }
  0xde   : > { %v402_v31 = vpop.f32.mrf.mxu0  ;;  %v482_v33 = vpop.f32.mrf.mxu1 }
  0xdf   : > { %v403_v32 = vadd.f32 %v402_v31, %v1637_v28  ;;  %v483_v34 = vadd.f32 %v482_v33, %v1637_v28 }
  0xe0   : > { %v1645_v35 = vpop.f32.mrf.mxu0  ;;  %v1647_v37 = vpop.f32.mrf.mxu1 }
  0xe1   : > { %v1060_v36 = vmul.f32 -1.442695, %v403_v32  ;;  %v1076_v38 = vmul.f32 -1.442695, %v483_v34 }
  0xe2   : > { %v406_v39 = vpop.f32.mrf.mxu0  ;;  %v486_v41 = vpop.f32.mrf.mxu1 }
  0xe3   : > { %1321 = vpow2.f32 %v1060_v36  ;;  %v407_v40 = vadd.f32 %v406_v39, %v1637_v28  ;;  %v487_v42 = vadd.f32 %v486_v41, %v1637_v28 }
  0xe4   : > { %1323 = vpow2.f32 %v1076_v38  ;;  %v1651_v43 = vpop.f32.mrf.mxu0  ;;  %v1653_v45 = vpop.f32.mrf.mxu1 }
  0xe5   : > { %v1061_v44 = vmul.f32 -1.442695, %v407_v40  ;;  %v1077_v46 = vmul.f32 -1.442695, %v487_v42  ;;  %v211_v40 = vsub.s32 0, %v1628_v25 }
  0xe6   : > { %v412_v47 = vpop.f32.mrf.mxu0  ;;  %v492_v49 = vpop.f32.mrf.mxu1 }
  0xe7   : > { %1325 = vpow2.f32 %v1061_v44  ;;  %v413_v48 = vadd.f32 %v412_v47, %v1637_v28  ;;  %v493_v50 = vadd.f32 %v492_v49, %v1637_v28 }
  0xe8   : > { %1327 = vpow2.f32 %v1077_v46  ;;  %v1657_v51 = vpop.f32.mrf.mxu0  ;;  %v1659_v53 = vpop.f32.mrf.mxu1 }
  0xe9   : > { %v1062_v52 = vmul.f32 -1.442695, %v413_v48  ;;  %v1078_v54 = vmul.f32 -1.442695, %v493_v50 }
  0xea   : > { %v416_v55 = vpop.f32.mrf.mxu0  ;;  %v496_v57 = vpop.f32.mrf.mxu1 }
  0xeb   : > { %1329 = vpow2.f32 %v1062_v52  ;;  %v417_v56 = vadd.f32 %v416_v55, %v1637_v28  ;;  %v497_v58 = vadd.f32 %v496_v57, %v1637_v28 }
  0xec   : > { %1331 = vpow2.f32 %v1078_v54  ;;  %v1663_v59 = vpop.f32.mrf.mxu0  ;;  %v1665_v61 = vpop.f32.mrf.mxu1 }
  0xed   : > { %v1063_v60 = vmul.f32 -1.442695, %v417_v56  ;;  %v1079_v62 = vmul.f32 -1.442695, %v497_v58  ;;  %v1693_v56 = vrot.slane %v1634_v27, %v211_v40 }
  0xee   : > { %v422_v63 = vpop.f32.mrf.mxu0  ;;  %v502_v1 = vpop.f32.mrf.mxu1 }
  0xef   : > { %1333 = vpow2.f32 %v1063_v60  ;;  %v423_v0 = vadd.f32 %v422_v63, %v1637_v28  ;;  %v503_v3 = vadd.f32 %v502_v1, %v1637_v28 }
  0xf0   : > { %v1322_v2 = vpop.eup %1321  ;;  %1335 = vpow2.f32 %v1079_v62  ;;  %v1669_v4 = vpop.f32.mrf.mxu0 }
  0xf1   : > { %v1324_v5 = vpop.eup %1323  ;;  %v655_v6 = vadd.f32 1.0, %v1322_v2  ;;  %v1064_v7 = vmul.f32 -1.442695, %v423_v0  ;;  %v1671_v8 = vpop.f32.mrf.mxu1  ;;  %v1080_v10 = vmul.f32 -1.442695, %v503_v3 }
  0xf2   : > { %v671_v9 = vadd.f32 1.0, %v1324_v5  ;;  %v426_v11 = vpop.f32.mrf.mxu0 }
  0xf3   : > { %1337 = vrcp.f32 %v655_v6  ;;  %v427_v12 = vadd.f32 %v426_v11, %v1637_v28  ;;  %v506_v13 = vpop.f32.mrf.mxu1 }
  0xf4   : > { %v1326_v14 = vpop.eup %1325  ;;  %1339 = vrcp.f32 %v671_v9  ;;  %v507_v15 = vadd.f32 %v506_v13, %v1637_v28  ;;  %v1675_v16 = vpop.f32.mrf.mxu0  ;;  %v481_v9 = vadd.f32 %v1641_v30, %v1693_v56  ;;  %v405_v13 = vadd.f32 %v1645_v35, %v1693_v56 }
  0xf5   : > { %v1328_v17 = vpop.eup %1327  ;;  %v656_v18 = vadd.f32 1.0, %v1326_v14  ;;  %1341 = vpow2.f32 %v1064_v7  ;;  %v1065_v19 = vmul.f32 -1.442695, %v427_v12  ;;  %v1677_v20 = vpop.f32.mrf.mxu1  ;;  %v401_v7 = vadd.f32 %v1639_v29, %v1693_v56 }
  0xf6   : > { %v672_v21 = vadd.f32 1.0, %v1328_v17  ;;  %1343 = vpow2.f32 %v1080_v10  ;;  %v1081_v22 = vmul.f32 -1.442695, %v507_v15  ;;  %v432_v23 = vpop.f32.mrf.mxu0  ;;  %v485_v29 = vadd.f32 %v1647_v37, %v1693_v56 }
  0xf7   : > { %1345 = vrcp.f32 %v656_v18  ;;  %v433_v24 = vadd.f32 %v432_v23, %v1637_v28  ;;  %v512_v26 = vpop.f32.mrf.mxu1 }
  0xf8   : > { %v1330_v31 = vpop.eup %1329  ;;  %1347 = vrcp.f32 %v672_v21  ;;  %v513_v32 = vadd.f32 %v512_v26, %v1637_v28  ;;  %v1681_v33 = vpop.f32.mrf.mxu0 }
  0xf9   : > { %v1332_v34 = vpop.eup %1331  ;;  %v657_v36 = vadd.f32 1.0, %v1330_v31  ;;  %1349 = vpow2.f32 %v1065_v19  ;;  %v1066_v38 = vmul.f32 -1.442695, %v433_v24  ;;  %v1683_v39 = vpop.f32.mrf.mxu1 }
  0xfa   : > { %v673_v41 = vadd.f32 1.0, %v1332_v34  ;;  %1351 = vpow2.f32 %v1081_v22  ;;  %v1082_v42 = vmul.f32 -1.442695, %v513_v32  ;;  %v436_v44 = vpop.f32.mrf.mxu0 }
  0xfb   : > { %1353 = vrcp.f32 %v657_v36  ;;  %v437_v46 = vadd.f32 %v436_v44, %v1637_v28  ;;  %v516_v47 = vpop.f32.mrf.mxu1 }
  0xfc   : > { %v1334_v48 = vpop.eup %1333  ;;  %1355 = vrcp.f32 %v673_v41  ;;  %v517_v49 = vadd.f32 %v516_v47, %v1637_v28  ;;  %v1688_v50 = vpop.f32.mrf.mxu0 }
  0xfd   : > { %v1336_v52 = vpop.eup %1335  ;;  %v658_v54 = vadd.f32 1.0, %v1334_v48  ;;  %1357 = vpow2.f32 %v1066_v38  ;;  %v1067_v55 = vmul.f32 -1.442695, %v437_v46  ;;  %v1690_v25 = vpop.f32.mrf.mxu1 }
  0xfe   : > { %v674_v57 = vadd.f32 1.0, %v1336_v52  ;;  %1359 = vpow2.f32 %v1082_v42  ;;  %v1083_v58 = vmul.f32 -1.442695, %v517_v49  ;;  %v442_v60 = vpop.f32.mrf.mxu0 }
  0xff   : > { %1361 = vrcp.f32 %v658_v54  ;;  %v443_v62 = vadd.f32 %v442_v60, %v1637_v28  ;;  %v522_v63 = vpop.f32.mrf.mxu1  ;;  %v411_v60 = vadd.f32 %v1651_v43, %v1693_v56 }
 0x100   : > { %v1338_v0 = vpop.eup %1337  ;;  %1363 = vrcp.f32 %v674_v57  ;;  %v523_v1 = vadd.f32 %v522_v63, %v1637_v28  ;;  %v1698_v2 = vpop.f32.mrf.mxu0 }
 0x101   : > { %v1340_v3 = vpop.eup %1339  ;;  %1365 = vpow2.f32 %v1067_v55  ;;  %v1068_v27 = vmul.f32 -1.442695, %v443_v62  ;;  %v1700_v5 = vpop.f32.mrf.mxu1  ;;  %v751_v35 = vmul.f32 %v1338_v0, %v401_v7  ;;  %v491_v62 = vadd.f32 %v1653_v45, %v1693_v56 }
 0x102   : > { %v1342_v6 = vpop.eup %1341  ;;  %1367 = vpow2.f32 %v1083_v58  ;;  %v1084_v10 = vmul.f32 -1.442695, %v523_v1  ;;  %v446_v11 = vpop.f32.mrf.mxu0  ;;  %v767_v32 = vmul.f32 %v1340_v3, %v481_v9  ;;  %v415_v3 = vadd.f32 %v1657_v51, %v1693_v56 }
 0x103   : > { %v1344_v12 = vpop.eup %1343  ;;  %v659_v14 = vadd.f32 1.0, %v1342_v6  ;;  %1369 = vpow2.f32 %v1068_v27  ;;  %v447_v15 = vadd.f32 %v446_v11, %v1637_v28  ;;  %v526_v17 = vpop.f32.mrf.mxu1 }
 0x104   : > { %v1346_v18 = vpop.eup %1345  ;;  %v675_v30 = vadd.f32 1.0, %v1344_v12  ;;  %1371 = vpow2.f32 %v1084_v10  ;;  %v527_v19 = vadd.f32 %v526_v17, %v1637_v28  ;;  %v1716_v21 = vpop.f32.mrf.mxu0  ;;  %v495_v10 = vadd.f32 %v1659_v53, %v1693_v56 }
 0x105   : > { %v1348_v22 = vpop.eup %1347  ;;  %v752_v23 = vmul.f32 %v1346_v18, %v405_v13  ;;  %1373 = vrcp.f32 %v659_v14  ;;  %v1069_v24 = vmul.f32 -1.442695, %v447_v15  ;;  %v1718_v26 = vpop.f32.mrf.mxu1 }
 0x106   : > { %v1350_v31 = vpop.eup %1349  ;;  %v768_v34 = vmul.f32 %v1348_v22, %v485_v29  ;;  %1375 = vrcp.f32 %v675_v30  ;;  %v1085_v36 = vmul.f32 -1.442695, %v527_v19  ;;  %v452_v37 = vpop.f32.mrf.mxu0 }
 0x107   : > { %v1352_v38 = vpop.eup %1351  ;;  %v1165_v40 = vpack.c.bf16 %v752_v23, %v751_v35  ;;  %v660_v41 = vadd.f32 1.0, %v1350_v31  ;;  %1377 = vpow2.f32 %v1069_v24  ;;  %v453_v42 = vadd.f32 %v452_v37, %v1637_v28  ;;  %v532_v44 = vpop.f32.mrf.mxu1 }
 0x108   : > { %v1354_v46 = vpop.eup %1353  ;;  %v1205_v47 = vpack.c.bf16 %v768_v34, %v767_v32  ;;  %v676_v48 = vadd.f32 1.0, %v1352_v38  ;;  %1379 = vpow2.f32 %v1085_v36  ;;  %v533_v49 = vadd.f32 %v532_v44, %v1637_v28  ;;  %v1722_v52 = vpop.f32.mrf.mxu0 }
 0x109   : > { %v1356_v54 = vpop.eup %1355  ;;  %1166 = vst [vmem:[%s1725_s10] sm:$0xff] %v1165_v40   ;;  %1381 = vrcp.f32 %v660_v41  ;;  %v1070_v55 = vmul.f32 -1.442695, %v453_v42  ;;  %v1728_v57 = vpop.f32.mrf.mxu1  ;;  %v753_v13 = vmul.f32 %v1354_v46, %v411_v60  ;;  %v421_v60 = vadd.f32 %v1663_v59, %v1693_v56 }
 0x10a   : > { %v1358_v58 = vpop.eup %1357  ;;  %1249 = vst [vmem:[%s1725_s10 + $0x40] sm:$0xff] %v1205_v47   ;;  %1383 = vrcp.f32 %v676_v48  ;;  %v1086_v63 = vmul.f32 -1.442695, %v533_v49  ;;  %v456_v0 = vpop.f32.mrf.mxu0  ;;  %v769_v18 = vmul.f32 %v1356_v54, %v491_v62  ;;  %v501_v62 = vadd.f32 %v1665_v61, %v1693_v56 }
 0x10b   : > { %v1360_v1 = vpop.eup %1359  ;;  %v661_v27 = vadd.f32 1.0, %v1358_v58  ;;  %1385 = vpow2.f32 %v1070_v55  ;;  %v457_v6 = vadd.f32 %v456_v0, %v1637_v28  ;;  %v536_v7 = vpop.f32.mrf.mxu1  ;;  %v505_v59 = vadd.f32 %v1671_v8, %v1693_v56 }
 0x10c   : > { %v1362_v9 = vpop.eup %1361  ;;  %v677_v43 = vadd.f32 1.0, %v1360_v1  ;;  %1387 = vpow2.f32 %v1086_v63  ;;  %v537_v45 = vadd.f32 %v536_v7, %v1637_v28  ;;  %v1741_v11 = vpop.f32.mrf.mxu0 }
 0x10d   : > { %v1364_v12 = vpop.eup %1363  ;;  %v754_v14 = vmul.f32 %v1362_v9, %v415_v3  ;;  %1389 = vrcp.f32 %v661_v27  ;;  %v1071_v51 = vmul.f32 -1.442695, %v457_v6  ;;  %v1743_v15 = vpop.f32.mrf.mxu1  ;;  %v425_v3 = vadd.f32 %v1669_v4, %v1693_v56 }
 0x10e   : > { %v1366_v17 = vpop.eup %1365  ;;  %v770_v29 = vmul.f32 %v1364_v12, %v495_v10  ;;  %1391 = vrcp.f32 %v677_v43  ;;  %v1087_v30 = vmul.f32 -1.442695, %v537_v45  ;;  %v462_v53 = vpop.f32.mrf.mxu0 }
 0x10f   : > { %v1368_v19 = vpop.eup %1367  ;;  %v1170_v22 = vpack.c.bf16 %v754_v14, %v753_v13  ;;  %v662_v35 = vadd.f32 1.0, %v1366_v17  ;;  %1393 = vpow2.f32 %v1071_v51  ;;  %v463_v23 = vadd.f32 %v462_v53, %v1637_v28  ;;  %v542_v24 = vpop.f32.mrf.mxu1 }
 0x110   : > { %v1370_v31 = vpop.eup %1369  ;;  %v1210_v32 = vpack.c.bf16 %v770_v29, %v769_v18  ;;  %v678_v34 = vadd.f32 1.0, %v1368_v19  ;;  %1395 = vpow2.f32 %v1087_v30  ;;  %v543_v36 = vadd.f32 %v542_v24, %v1637_v28  ;;  %v1747_v37 = vpop.f32.mrf.mxu0 }
 0x111   : > { %v1372_v38 = vpop.eup %1371  ;;  %1242 = vst [vmem:[%s1725_s10 + $0x8] sm:$0xff] %v1170_v22   ;;  %1397 = vrcp.f32 %v662_v35  ;;  %v663_v40 = vadd.f32 1.0, %v1370_v31  ;;  %v1072_v41 = vmul.f32 -1.442695, %v463_v23  ;;  %v1750_v42 = vpop.f32.mrf.mxu1 }
 0x112   : > { %v1374_v44 = vpop.eup %1373  ;;  %1250 = vst [vmem:[%s1725_s10 + $0x48] sm:$0xff] %v1210_v32   ;;  %1399 = vrcp.f32 %v678_v34  ;;  %v679_v46 = vadd.f32 1.0, %v1372_v38  ;;  %v1088_v47 = vmul.f32 -1.442695, %v543_v36  ;;  %v466_v48 = vpop.f32.mrf.mxu0  ;;  %v431_v38 = vadd.f32 %v1675_v16, %v1693_v56 }
 0x113   : > { %v1376_v49 = vpop.eup %1375  ;;  %1401 = vrcp.f32 %v663_v40  ;;  %v467_v54 = vadd.f32 %v466_v48, %v1637_v28  ;;  %v546_v55 = vpop.f32.mrf.mxu1  ;;  %v755_v12 = vmul.f32 %v1374_v44, %v421_v60  ;;  %v511_v44 = vadd.f32 %v1677_v20, %v1693_v56 }
 0x114   : > { %v1378_v58 = vpop.eup %1377  ;;  %1403 = vrcp.f32 %v679_v46  ;;  %v547_v63 = vadd.f32 %v546_v55, %v1637_v28  ;;  %v1759_v0 = vpop.f32.mrf.mxu0  ;;  %v771_v17 = vmul.f32 %v1376_v49, %v501_v62  ;;  %v435_v49 = vadd.f32 %v1681_v33, %v1693_v56 }
 0x115   : > { %v1380_v1 = vpop.eup %1379  ;;  %v664_v27 = vadd.f32 1.0, %v1378_v58  ;;  %1405 = vpow2.f32 %v1072_v41  ;;  %v1073_v6 = vmul.f32 -1.442695, %v467_v54  ;;  %v1763_v7 = vpop.f32.mrf.mxu1  ;;  %v515_v54 = vadd.f32 %v1683_v39, %v1693_v56 }
 0x116   : > { %v1382_v9 = vpop.eup %1381  ;;  %v680_v10 = vadd.f32 1.0, %v1380_v1  ;;  %1407 = vpow2.f32 %v1088_v47  ;;  %v1089_v61 = vmul.f32 -1.442695, %v547_v63  ;;  %v472_v43 = vpop.f32.mrf.mxu0 }
 0x117   : > { %v1384_v45 = vpop.eup %1383  ;;  %v756_v13 = vmul.f32 %v1382_v9, %v425_v3  ;;  %1409 = vrcp.f32 %v664_v27  ;;  %v473_v14 = vadd.f32 %v472_v43, %v1637_v28  ;;  %v552_v4 = vpop.f32.mrf.mxu1 }
 0x118   : > { %v1386_v51 = vpop.eup %1385  ;;  %v772_v18 = vmul.f32 %v1384_v45, %v505_v59  ;;  %1411 = vrcp.f32 %v680_v10  ;;  %v553_v29 = vadd.f32 %v552_v4, %v1637_v28  ;;  %v1769_v30 = vpop.f32.mrf.mxu0  ;;  %v441_v10 = vadd.f32 %v1688_v50, %v1693_v56 }
 0x119   : > { %v1388_v8 = vpop.eup %1387  ;;  %v1175_v53 = vpack.c.bf16 %v756_v13, %v755_v12  ;;  %v665_v19 = vadd.f32 1.0, %v1386_v51  ;;  %1413 = vpow2.f32 %v1073_v6  ;;  %v1074_v22 = vmul.f32 -1.442695, %v473_v14  ;;  %v1771_v35 = vpop.f32.mrf.mxu1 }
 0x11a   : > { %v1390_v23 = vpop.eup %1389  ;;  %v1215_v24 = vpack.c.bf16 %v772_v18, %v771_v17  ;;  %v681_v31 = vadd.f32 1.0, %v1388_v8  ;;  %1415 = vpow2.f32 %v1089_v61  ;;  %v1090_v32 = vmul.f32 -1.442695, %v553_v29  ;;  %v476_v34 = vpop.f32.mrf.mxu0 }
 0x11b   : > { %v1392_v36 = vpop.eup %1391  ;;  %1243 = vst [vmem:[%s1725_s10 + $0x10] sm:$0xff] %v1175_v53   ;;  %1417 = vrcp.f32 %v665_v19  ;;  %v556_v40 = vpop.f32.mrf.mxu1  ;;  %v477_v46 = vadd.f32 %v476_v34, %v1637_v28  ;;  %v757_v63 = vmul.f32 %v1390_v23, %v431_v38  ;;  %v445_v61 = vadd.f32 %v1698_v2, %v1693_v56 }
 0x11c   : > { %v1394_v41 = vpop.eup %1393  ;;  %1251 = vst [vmem:[%s1725_s10 + $0x50] sm:$0xff] %v1215_v24   ;;  %1419 = vrcp.f32 %v681_v31  ;;  %v557_v47 = vadd.f32 %v556_v40, %v1637_v28  ;;  %v773_v3 = vmul.f32 %v1392_v36, %v511_v44  ;;  %v521_v12 = vadd.f32 %v1690_v25, %v1693_v56 }
 0x11d   : > { %v1396_v48 = vpop.eup %1395  ;;  %v666_v16 = vadd.f32 1.0, %v1394_v41  ;;  %1421 = vpow2.f32 %v1074_v22  ;;  %v1075_v60 = vmul.f32 -1.442695, %v477_v46  ;;  %v525_v13 = vadd.f32 %v1700_v5, %v1693_v56 }
 0x11e   : > { %v1398_v55 = vpop.eup %1397  ;;  %v682_v58 = vadd.f32 1.0, %v1396_v48  ;;  %1423 = vpow2.f32 %v1090_v32  ;;  %v1091_v62 = vmul.f32 -1.442695, %v557_v47  ;;  %v451_v31 = vadd.f32 %v1716_v21, %v1693_v56 }
 0x11f   : > { %v1400_v20 = vpop.eup %1399  ;;  %v758_v1 = vmul.f32 %v1398_v55, %v435_v49  ;;  %1425 = vrcp.f32 %v666_v16  ;;  %v455_v32 = vadd.f32 %v1722_v52, %v1693_v56  ;;  %v531_v38 = vadd.f32 %v1718_v26, %v1693_v56 }
 0x120   : > { %v1402_v28 = vpop.eup %1401  ;;  %v774_v27 = vmul.f32 %v1400_v20, %v515_v54  ;;  %1427 = vrcp.f32 %v682_v58  ;;  %v535_v40 = vadd.f32 %v1728_v57, %v1693_v56 }
 0x121   : > { %v1404_v33 = vpop.eup %1403  ;;  %v1180_v6 = vpack.c.bf16 %v758_v1, %v757_v63  ;;  %1429 = vpow2.f32 %v1075_v60  ;;  %v759_v51 = vmul.f32 %v1402_v28, %v441_v10  ;;  %v461_v60 = vadd.f32 %v1741_v11, %v1693_v56 }
 0x122   : > { %v1406_v39 = vpop.eup %1405  ;;  %v1220_v9 = vpack.c.bf16 %v774_v27, %v773_v3  ;;  %1431 = vpow2.f32 %v1091_v62  ;;  %v775_v50 = vmul.f32 %v1404_v33, %v521_v12  ;;  %v465_v62 = vadd.f32 %v1747_v37, %v1693_v56 }
 0x123   : > { %v1408_v59 = vpop.eup %1407  ;;  %1244 = vst [vmem:[%s1725_s10 + $0x18] sm:$0xff] %v1180_v6   ;;  %v667_v43 = vadd.f32 1.0, %v1406_v39  ;;  %v541_v63 = vadd.f32 %v1743_v15, %v1693_v56  ;;  %v545_v1 = vadd.f32 %v1750_v42, %v1693_v56  ;;  %v475_v15 = vadd.f32 %v1769_v30, %v1693_v56 }
 0x124   : > { %v1410_v45 = vpop.eup %1409  ;;  %1252 = vst [vmem:[%s1725_s10 + $0x58] sm:$0xff] %v1220_v9   ;;  %v683_v14 = vadd.f32 1.0, %v1408_v59  ;;  %v471_v59 = vadd.f32 %v1759_v0, %v1693_v56  ;;  %v551_v10 = vadd.f32 %v1763_v7, %v1693_v56 }
 0x125   : > { %v1412_v4 = vpop.eup %1411  ;;  %v760_v17 = vmul.f32 %v1410_v45, %v445_v61  ;;  %1433 = vrcp.f32 %v667_v43  ;;  %v555_v61 = vadd.f32 %v1771_v35, %v1693_v56 }
 0x126   : > { %v1414_v18 = vpop.eup %1413  ;;  %v776_v29 = vmul.f32 %v1412_v4, %v525_v13  ;;  %1435 = vrcp.f32 %v683_v14 }
 0x127   : > { %v1416_v8 = vpop.eup %1415  ;;  %v1185_v2 = vpack.c.bf16 %v760_v17, %v759_v51  ;;  %v668_v53 = vadd.f32 1.0, %v1414_v18 }
 0x128   : > { %v1418_v19 = vpop.eup %1417  ;;  %v1225_v22 = vpack.c.bf16 %v776_v29, %v775_v50  ;;  %v684_v25 = vadd.f32 1.0, %v1416_v8 }
 0x129   : > { %v1420_v23 = vpop.eup %1419  ;;  %1245 = vst [vmem:[%s1725_s10 + $0x20] sm:$0xff] %v1185_v2   ;;  %1437 = vrcp.f32 %v668_v53  ;;  %v761_v46 = vmul.f32 %v1418_v19, %v451_v31 }
 0x12a   : > { %v1422_v5 = vpop.eup %1421  ;;  %1253 = vst [vmem:[%s1725_s10 + $0x60] sm:$0xff] %v1225_v22   ;;  %1439 = vrcp.f32 %v684_v25  ;;  %v777_v49 = vmul.f32 %v1420_v23, %v531_v38 }
 0x12b   : > { %v1424_v24 = vpop.eup %1423  ;;  %v669_v34 = vadd.f32 1.0, %v1422_v5 }
 0x12c   : > { %v1426_v36 = vpop.eup %1425  ;;  %v685_v41 = vadd.f32 1.0, %v1424_v24 }
 0x12d   : > { %v1428_v44 = vpop.eup %1427  ;;  %v762_v47 = vmul.f32 %v1426_v36, %v455_v32  ;;  %1441 = vrcp.f32 %v669_v34 }
 0x12e   : > { %v1430_v48 = vpop.eup %1429  ;;  %v778_v21 = vmul.f32 %v1428_v44, %v535_v40  ;;  %1443 = vrcp.f32 %v685_v41 }
 0x12f   : > { %v1432_v54 = vpop.eup %1431  ;;  %v1190_v16 = vpack.c.bf16 %v762_v47, %v761_v46  ;;  %v670_v52 = vadd.f32 1.0, %v1430_v48 }
 0x130   : > { %v1230_v55 = vpack.c.bf16 %v778_v21, %v777_v49  ;;  %v686_v58 = vadd.f32 1.0, %v1432_v54 }
 0x131   : > { %1246 = vst [vmem:[%s1725_s10 + $0x28] sm:$0xff] %v1190_v16   ;;  %1445 = vrcp.f32 %v670_v52 }
 0x132   : > { %1254 = vst [vmem:[%s1725_s10 + $0x68] sm:$0xff] %v1230_v55   ;;  %1447 = vrcp.f32 %v686_v58  ;;  %v1434_v26 = vpop.eup %1433 }
 0x133   : > { %v1436_v57 = vpop.eup %1435  ;;  %v763_v3 = vmul.f32 %v1434_v26, %v461_v60 }
 0x134   : > { %v779_v33 = vmul.f32 %v1436_v57, %v541_v63 }
 0x136   : > { %v1438_v20 = vpop.eup %1437 }
 0x137   : > { %v1440_v28 = vpop.eup %1439  ;;  %v764_v27 = vmul.f32 %v1438_v20, %v465_v62 }
 0x138   : > { %v780_v6 = vmul.f32 %v1440_v28, %v545_v1 }
 0x139   : > { %v1195_v39 = vpack.c.bf16 %v764_v27, %v763_v3 }
 0x13a   : > { %v1235_v9 = vpack.c.bf16 %v780_v6, %v779_v33  ;;  %v1442_v11 = vpop.eup %1441 }
 0x13b   : > { %1247 = vst [vmem:[%s1725_s10 + $0x30] sm:$0xff] %v1195_v39   ;;  %v1444_v37 = vpop.eup %1443  ;;  %v765_v45 = vmul.f32 %v1442_v11, %v471_v59 }
 0x13c   : > { %1255 = vst [vmem:[%s1725_s10 + $0x70] sm:$0xff] %v1235_v9   ;;  %v781_v0 = vmul.f32 %v1444_v37, %v551_v10 }
 0x13e   : > { %v1446_v42 = vpop.eup %1445 }
 0x13f   : > { %v1448_v43 = vpop.eup %1447  ;;  %v766_v12 = vmul.f32 %v1446_v42, %v475_v15 }
 0x140   : > { %v782_v13 = vmul.f32 %v1448_v43, %v555_v61 }
 0x141   : > { %v1200_v14 = vpack.c.bf16 %v766_v12, %v765_v45 }
 0x142   : > { %v1240_v56 = vpack.c.bf16 %v782_v13, %v781_v0 }
 0x143   : > { %1248 = vst [vmem:[%s1725_s10 + $0x38] sm:$0xff] %v1200_v14  }
 0x144   : > { %1256 = vst [vmem:[%s1725_s10 + $0x78] sm:$0xff] %v1240_v56  }
 0x145   : > { %1462 = shalt.err (!%p1459_p3)
}
 0x146   : > { %s1463_s29 = scalar_lea.hbm %s1830_s24, 2048  ;;  %s1467_s5 = scalar_lea.hbm %s1881_s3, 4096 }
 0x147   : > { %p1464_p4 = scmp.ne.s32.totalorder %s1830_s24, %s1463_s29  ;;  %p1468_p9 = scmp.lt.s32.totalorder %s1830_s24, %s1881_s3 }
 0x148   : > { %p1469_p10 = scmp.lt.s32.totalorder %s1467_s5, %s1463_s29 }
 0x149   : > { %p1465_p7 = pnand %p1464_p4, %p1574_p5 }
 0x14a   : > { %p1470_p11 = por %p1469_p10, %p1468_p9 }
 0x14b   : > { %p1466_p8 = pneg %p1465_p7 }
 0x14d   : > { %p1471_p12 = pnand %p1470_p11, %p1466_p8 }
 0x14f   : > { %1474 = shalt.err (!%p1471_p12)
}
 0x150   : > { %s1514_s8 = smov 64   ;;  %s1515_s9 = smov 4  }
 0x151   : > { %1259 = dma.vmem_to_hbm [thread:$0]  (%p1574_p5), %s1832_s17, 2048, %s1830_s24, %s1838_s16, %s1514_s8, %s1514_s8, %s1515_s9  }
 0x152 PF: > { %p1265_p13 = scmp.ge.s32.totalorder %s1509_s15, 2  ;;  %s972_s10 = sand.u32 1, %s1497_s12  }
 0x153   : > { %s973_s11 = scalar_lea.sflag [#allocation3], %s972_s10 }
 0x154   : > { %p1262_p0 = pnand %p1265_p13, %p1578_p6 }
 0x156   : > { %p1263_p1 = pneg %p1262_p0 }
 0x158   : > { %1492 = dma.done.wait (%p1263_p1), %s973_s11, 2048  }
 0x159   : > { %1494 = vsyncadd (%p1263_p1), %s973_s11, 4294965248  ;;  %p13_p2 = scmp.ge.s32.totalorder %s1561_s18, 4   ;;  %s1884_s12 = smov %s1501_s13 }
 0x15a   : > { %s1885_s13 = smov %s1505_s14  ;;  %s1886_s14 = smov %s1572_s21 }
 0x15b   : > { %s1887_s15 = smov %s1561_s18  ;;  %15 = sbr.rel (!%p13_p2) target bundleno = 3 (0x3), region = 67 }
 0x160   :  { %978 = vsyncpa [#allocation3], 1 }
 0x161   :  { %980 = vsyncpa [#allocation3 + $0x1], 1 }

</bundles_post_ra>
